<compile_context>
chip_gen: v5e
topology: v5e:2x2
jax: 0.10.0
libtpu: 0.0.40
codegen_flags: <defaults>
</compile_context>

<pallas_src>
import functools
import math

import jax
import jax.numpy as jnp
from jax.experimental import pallas as pl
from jax.experimental.pallas import tpu as pltpu


# ---------------------------------------------------------------------------
# Parameter glue (plain JAX, runs once under jit): quaternion Hamilton
# expansion and the fused dual-quaternion weight.
# ---------------------------------------------------------------------------
def make_quaternion_mul(kernel):
    """kernel: [D_in/4?, D_out] with D_out divisible by 4 -> [4*rows, D_out]."""
    r, i, j, k = jnp.split(kernel, 4, axis=1)
    r2 = jnp.concatenate([r, -i, -j, -k], axis=0)
    i2 = jnp.concatenate([i, r, -k, j], axis=0)
    j2 = jnp.concatenate([j, k, r, -i], axis=0)
    k2 = jnp.concatenate([k, -j, i, r], axis=0)
    hamilton = jnp.concatenate([r2, i2, j2, k2], axis=1)
    assert kernel.shape[1] == hamilton.shape[1]
    return hamilton


def make_dual_quaternion_weight(A, B):
    """Fused weight so that input @ W == dual_quaternion_mul(A, B, input).

    input = [C | D],  W = [[A_h, B_h],
                           [ 0 , A_h]]
    input @ W = [C@A_h | C@B_h + D@A_h] = [AC | AD + BC].
    """
    A_h = make_quaternion_mul(A)                      # [in/2, out/2]
    B_h = make_quaternion_mul(B)                      # [in/2, out/2]
    Z = jnp.zeros_like(A_h)
    return jnp.block([[A_h, B_h], [Z, A_h]])          # [in, out]


def _round_up(x, m):
    return ((x + m - 1) // m) * m


def _pick_row_tile(n):
    # Largest bf16-friendly row tile (multiple of 16) dividing N that still
    # leaves >= 2 grid steps so adj streams through VMEM; else one full block.
    for tm in (512, 256, 128, 64, 32, 16):
        if n % tm == 0 and n // tm >= 2:
            return tm
    return n


# ---------------------------------------------------------------------------
# Pallas kernel: fused (x @ W_fused) -> row-tiled adj @ support -> batch-norm
# -> tanh.  Grid iterates sequentially over adj row tiles ("arbitrary").
# ---------------------------------------------------------------------------
def dqgnn_kernel(x_ref, w_ref, adj_ref, gamma_ref, beta_ref,
                 out_ref, support_ref, *, eps):
    i = pl.program_id(0)
    tm = adj_ref.shape[0]

    # One-time encode: support = input @ W_fused  (bf16 MXU, f32 accumulate).
    @pl.when(i == 0)
    def _():
        support_ref[...] = jnp.dot(
            x_ref[...], w_ref[...],
            preferred_element_type=jnp.float32).astype(support_ref.dtype)

    # Aggregate this row tile: y_tile = adj_tile @ support.
    y_tile = jnp.dot(adj_ref[...], support_ref[...],
                     preferred_element_type=jnp.float32)
    row0 = pl.multiple_of(i * tm, tm)
    out_ref[pl.ds(row0, tm), :] = y_tile

    # Finalize on the last tile: BatchNorm1d (batch statistics) + tanh, f32.
    @pl.when(i == pl.num_programs(0) - 1)
    def _():
        y = out_ref[...]
        mean = jnp.mean(y, axis=0, keepdims=True)
        var = jnp.mean(jnp.square(y - mean), axis=0, keepdims=True)  # biased
        y_hat = (y - mean) * jax.lax.rsqrt(var + eps)
        out_ref[...] = jnp.tanh(gamma_ref[...] * y_hat + beta_ref[...])


def dqgnn_forward(x, adj, params, eps=1e-5):
    """x: [N, in_features] f32, adj: [N, N] f32 (dense). Returns [N, out] f32."""
    N, in_features = x.shape
    out_features = 2 * params["A"].shape[1]

    w_fused = make_dual_quaternion_weight(params["A"], params["B"])

    # Lane-dense padding of the feature axes (zeros -> results unchanged).
    f_pad = _round_up(in_features, 128)
    h_pad = _round_up(out_features, 128)

    x_p = jnp.zeros((N, f_pad), jnp.bfloat16).at[:, :in_features].set(
        x.astype(jnp.bfloat16))
    w_p = jnp.zeros((f_pad, h_pad), jnp.bfloat16).at[
        :in_features, :out_features].set(w_fused.astype(jnp.bfloat16))
    adj_b = adj.astype(jnp.bfloat16)
    gamma_p = jnp.ones((1, h_pad), jnp.float32).at[0, :out_features].set(
        params["gamma"])
    beta_p = jnp.zeros((1, h_pad), jnp.float32).at[0, :out_features].set(
        params["beta"])

    tm = _pick_row_tile(N)
    grid = (N // tm,)

    resident = lambda shape: pl.BlockSpec(shape, lambda i: (0,) * len(shape))

    out = pl.pallas_call(
        functools.partial(dqgnn_kernel, eps=eps),
        out_shape=jax.ShapeDtypeStruct((N, h_pad), jnp.float32),
        grid=grid,
        in_specs=[
            resident((N, f_pad)),                        # x      (resident)
            resident((f_pad, h_pad)),                    # W      (resident)
            pl.BlockSpec((tm, N), lambda i: (i, 0)),     # adj    (row-streamed)
            resident((1, h_pad)),                        # gamma
            resident((1, h_pad)),                        # beta
        ],
        out_specs=resident((N, h_pad)),                  # output (resident)
        scratch_shapes=[pltpu.VMEM((N, h_pad), jnp.bfloat16)],   # support
        compiler_params=pltpu.CompilerParams(
            dimension_semantics=("arbitrary",)),
    )(x_p, w_p, adj_b, gamma_p, beta_p)

    return out[:, :out_features]


# ---------------------------------------------------------------------------
# Pure-JAX reference (mirrors the PyTorch forward) for a correctness check.
# ---------------------------------------------------------------------------
def reference_forward(x, adj, params, eps=1e-5):
    A_h = make_quaternion_mul(params["A"])
    B_h = make_quaternion_mul(params["B"])
    C, D = jnp.split(x, 2, axis=1)
    support = jnp.concatenate([C @ A_h, D @ A_h + C @ B_h], axis=1)
    y = adj @ support
    mean = jnp.mean(y, axis=0, keepdims=True)
    var = jnp.mean(jnp.square(y - mean), axis=0, keepdims=True)
    y_hat = (y - mean) / jnp.sqrt(var + eps)
    return jnp.tanh(params["gamma"] * y_hat + params["beta"])


def init_params(key, in_features, out_features):
    """Glorot-uniform A, B (as in reset_parameters) + BatchNorm affine."""
    kA, kB = jax.random.split(key)
    shape = (in_features // 8, out_features // 2)
    stdv = math.sqrt(6.0 / (shape[0] + shape[1]))
    return {
        "A": jax.random.uniform(kA, shape, jnp.float32, -stdv, stdv),
        "B": jax.random.uniform(kB, shape, jnp.float32, -stdv, stdv),
        "gamma": jnp.ones((out_features,), jnp.float32),
        "beta": jnp.zeros((out_features,), jnp.float32),
    }


if __name__ == "__main__":
    N = 128               # number of graph nodes
    IN_FEATURES = 16      # divisible by 8 (dual-quaternion split)
    OUT_FEATURES = 32     # divisible by 8

    key = jax.random.PRNGKey(0)
    kx, kadj, kp = jax.random.split(key, 3)

    x = jax.random.normal(kx, (N, IN_FEATURES), dtype=jnp.float32)
    # sparse-ish symmetric, self-looped, row-normalized adjacency (dense array)
    a_raw = (jax.random.uniform(kadj, (N, N)) < 0.08).astype(jnp.float32)
    adj = jnp.clip(a_raw + a_raw.T + jnp.eye(N, dtype=jnp.float32), 0.0, 1.0)
    adj = adj / jnp.sum(adj, axis=1, keepdims=True)

    params = init_params(kp, IN_FEATURES, OUT_FEATURES)

    fwd = jax.jit(dqgnn_forward)      # jit-caches the Hamilton/fused-weight glue
    out = jax.block_until_ready(fwd(x, adj, params))

    ref = reference_forward(x, adj, params)
    assert out.shape == (N, OUT_FEATURES)
    max_err = float(jnp.max(jnp.abs(out - ref)))
    assert jnp.allclose(out, ref, atol=5e-2, rtol=5e-2), f"max abs err {max_err}"

    print("KERNEL_OK")
</pallas_src>

<mosaic_0001>
module attributes {stable_mosaic.version = 11 : i64} {
  func.func @dqgnn_kernel(%arg0: i32, %arg1: memref<128x128xbf16, #tpu.memory_space<vmem>>, %arg2: memref<128x128xbf16, #tpu.memory_space<vmem>>, %arg3: memref<64x128xbf16, #tpu.memory_space<vmem>>, %arg4: memref<1x128xf32, #tpu.memory_space<vmem>>, %arg5: memref<1x128xf32, #tpu.memory_space<vmem>>, %arg6: memref<128x128xf32, #tpu.memory_space<vmem>>, %arg7: memref<128x128xbf16, #tpu.memory_space<vmem>>) attributes {dimension_semantics = [#tpu.dimension_semantics<arbitrary>], iteration_bounds = array<i64: 2>, scalar_prefetch = 0 : i64, scratch_operands = 1 : i64, tpu.core_type = #tpu.core_type<tc>, window_params = [{pipeline_mode = #tpu.pipeline_mode<synchronous>, transform_indices = @transform_0, window_bounds = array<i64: 128, 128>}, {pipeline_mode = #tpu.pipeline_mode<synchronous>, transform_indices = @transform_1, window_bounds = array<i64: 128, 128>}, {transform_indices = @transform_2, window_bounds = array<i64: 64, 128>}, {pipeline_mode = #tpu.pipeline_mode<synchronous>, transform_indices = @transform_3, window_bounds = array<i64: 1, 128>}, {pipeline_mode = #tpu.pipeline_mode<synchronous>, transform_indices = @transform_4, window_bounds = array<i64: 1, 128>}, {pipeline_mode = #tpu.pipeline_mode<synchronous>, transform_indices = @transform_5, window_bounds = array<i64: 128, 128>}]} {
    %c0_i32 = arith.constant 0 : i32
    %0 = arith.cmpi eq, %arg0, %c0_i32 : i32
    %1 = arith.extui %0 : i1 to i32
    %c0_i32_0 = arith.constant 0 : i32
    %2 = arith.cmpi ne, %1, %c0_i32_0 : i32
    scf.if %2 {
      %c0_6 = arith.constant 0 : index
      %c0_7 = arith.constant 0 : index
      %13 = vector.load %arg1[%c0_6, %c0_7] : memref<128x128xbf16, #tpu.memory_space<vmem>>, vector<128x128xbf16>
      %c0_8 = arith.constant 0 : index
      %c0_9 = arith.constant 0 : index
      %14 = vector.load %arg2[%c0_8, %c0_9] : memref<128x128xbf16, #tpu.memory_space<vmem>>, vector<128x128xbf16>
      %cst_10 = arith.constant dense<0.000000e+00> : vector<128x128xf32>
      %15 = tpu.matmul %13, %14, %cst_10 {dimension_numbers = #tpu.dot_dimension_numbers<[1], [0], [0], [1], [0, 0, 1, 1], [], []>} : vector<128x128xbf16>, vector<128x128xbf16>, vector<128x128xf32> -> vector<128x128xf32>
      %16 = arith.truncf %15 : vector<128x128xf32> to vector<128x128xbf16>
      %c0_11 = arith.constant 0 : index
      %c0_12 = arith.constant 0 : index
      %17 = vector.load %arg7[%c0_11, %c0_12] : memref<128x128xbf16, #tpu.memory_space<vmem>>, vector<128x128xbf16>
      tpu.vector_store %arg7[%c0_11, %c0_12], %16 {strides = array<i32>} : memref<128x128xbf16, #tpu.memory_space<vmem>>, vector<128x128xbf16>,
    } else {
    }
    %c0 = arith.constant 0 : index
    %c0_1 = arith.constant 0 : index
    %3 = vector.load %arg3[%c0, %c0_1] : memref<64x128xbf16, #tpu.memory_space<vmem>>, vector<64x128xbf16>
    %c0_2 = arith.constant 0 : index
    %c0_3 = arith.constant 0 : index
    %4 = vector.load %arg7[%c0_2, %c0_3] : memref<128x128xbf16, #tpu.memory_space<vmem>>, vector<128x128xbf16>
    %cst = arith.constant dense<0.000000e+00> : vector<64x128xf32>
    %5 = tpu.matmul %3, %4, %cst {dimension_numbers = #tpu.dot_dimension_numbers<[1], [0], [0], [1], [0, 0, 1, 1], [], []>} : vector<64x128xbf16>, vector<128x128xbf16>, vector<64x128xf32> -> vector<64x128xf32>
    %c64_i32 = arith.constant 64 : i32
    %6 = arith.muli %arg0, %c64_i32 : i32
    %7 = tpu.assume_multiple %6, 64 : i32
    %8 = arith.index_cast %7 : i32 to index
    %c0_4 = arith.constant 0 : index
    %9 = vector.load %arg6[%8, %c0_4] : memref<128x128xf32, #tpu.memory_space<vmem>>, vector<64x128xf32>
    tpu.vector_store %arg6[%8, %c0_4], %5 {strides = array<i32>} : memref<128x128xf32, #tpu.memory_space<vmem>>, vector<64x128xf32>,
    %c1_i32 = arith.constant 1 : i32
    %10 = arith.cmpi eq, %arg0, %c1_i32 : i32
    %11 = arith.extui %10 : i1 to i32
    %c0_i32_5 = arith.constant 0 : i32
    %12 = arith.cmpi ne, %11, %c0_i32_5 : i32
    scf.if %12 {
      %c0_6 = arith.constant 0 : index
      %c0_7 = arith.constant 0 : index
      %13 = vector.load %arg6[%c0_6, %c0_7] : memref<128x128xf32, #tpu.memory_space<vmem>>, vector<128x128xf32>
      %cst_8 = arith.constant dense<0.000000e+00> : vector<128xf32>
      %14 = vector.multi_reduction <add>, %13, %cst_8 [0] : vector<128x128xf32> to vector<128xf32>
      %15 = vector.shape_cast %14 : vector<128xf32> to vector<1x128xf32>
      %cst_9 = arith.constant 1.280000e+02 : f32
      %16 = vector.broadcast %cst_9 : f32 to vector<1x128xf32>
      %17 = arith.divf %15, %16 : vector<1x128xf32>
      %18 = vector.broadcast %17 : vector<1x128xf32> to vector<128x128xf32>
      %19 = arith.subf %13, %18 : vector<128x128xf32>
      %20 = arith.mulf %19, %19 : vector<128x128xf32>
      %cst_10 = arith.constant dense<0.000000e+00> : vector<128xf32>
      %21 = vector.multi_reduction <add>, %20, %cst_10 [0] : vector<128x128xf32> to vector<128xf32>
      %22 = vector.shape_cast %21 : vector<128xf32> to vector<1x128xf32>
      %cst_11 = arith.constant 1.280000e+02 : f32
      %23 = vector.broadcast %cst_11 : f32 to vector<1x128xf32>
      %24 = arith.divf %22, %23 : vector<1x128xf32>
      %25 = vector.broadcast %17 : vector<1x128xf32> to vector<128x128xf32>
      %26 = arith.subf %13, %25 : vector<128x128xf32>
      %cst_12 = arith.constant 9.99999974E-6 : f32
      %27 = vector.broadcast %cst_12 : f32 to vector<1x128xf32>
      %28 = arith.addf %24, %27 : vector<1x128xf32>
      %29 = math.rsqrt %28 : vector<1x128xf32>
      %30 = vector.broadcast %29 : vector<1x128xf32> to vector<128x128xf32>
      %31 = arith.mulf %26, %30 : vector<128x128xf32>
      %c0_13 = arith.constant 0 : index
      %c0_14 = arith.constant 0 : index
      %32 = vector.load %arg4[%c0_13, %c0_14] : memref<1x128xf32, #tpu.memory_space<vmem>>, vector<1x128xf32>
      %33 = vector.broadcast %32 : vector<1x128xf32> to vector<128x128xf32>
      %34 = arith.mulf %33, %31 : vector<128x128xf32>
      %c0_15 = arith.constant 0 : index
      %c0_16 = arith.constant 0 : index
      %35 = vector.load %arg5[%c0_15, %c0_16] : memref<1x128xf32, #tpu.memory_space<vmem>>, vector<1x128xf32>
      %36 = vector.broadcast %35 : vector<1x128xf32> to vector<128x128xf32>
      %37 = arith.addf %34, %36 : vector<128x128xf32>
      %38 = math.tanh %37 : vector<128x128xf32>
      %c0_17 = arith.constant 0 : index
      %c0_18 = arith.constant 0 : index
      %39 = vector.load %arg6[%c0_17, %c0_18] : memref<128x128xf32, #tpu.memory_space<vmem>>, vector<128x128xf32>
      tpu.vector_store %arg6[%c0_17, %c0_18], %38 {strides = array<i32>} : memref<128x128xf32, #tpu.memory_space<vmem>>, vector<128x128xf32>,
    } else {
    }
    return
  }
  func.func @transform_0(%arg0: i32) -> (i32, i32) {
    %c0_i32 = arith.constant 0 : i32
    %c0_i32_0 = arith.constant 0 : i32
    %c0_i32_1 = arith.constant 0 : i32
    return %c0_i32, %c0_i32_0 : i32, i32
  }
  func.func @transform_1(%arg0: i32) -> (i32, i32) {
    %c0_i32 = arith.constant 0 : i32
    %c0_i32_0 = arith.constant 0 : i32
    %c0_i32_1 = arith.constant 0 : i32
    return %c0_i32, %c0_i32_0 : i32, i32
  }
  func.func @transform_2(%arg0: i32) -> (i32, i32) {
    %c0_i32 = arith.constant 0 : i32
    %c0_i32_0 = arith.constant 0 : i32
    return %arg0, %c0_i32 : i32, i32
  }
  func.func @transform_3(%arg0: i32) -> (i32, i32) {
    %c0_i32 = arith.constant 0 : i32
    %c0_i32_0 = arith.constant 0 : i32
    %c0_i32_1 = arith.constant 0 : i32
    return %c0_i32, %c0_i32_0 : i32, i32
  }
  func.func @transform_4(%arg0: i32) -> (i32, i32) {
    %c0_i32 = arith.constant 0 : i32
    %c0_i32_0 = arith.constant 0 : i32
    %c0_i32_1 = arith.constant 0 : i32
    return %c0_i32, %c0_i32_0 : i32, i32
  }
  func.func @transform_5(%arg0: i32) -> (i32, i32) {
    %c0_i32 = arith.constant 0 : i32
    %c0_i32_0 = arith.constant 0 : i32
    %c0_i32_1 = arith.constant 0 : i32
    return %c0_i32, %c0_i32_0 : i32, i32
  }
}

</mosaic_0001>

<bundles_post_ra>
// kernel: dqgnn_forward.1
= control target key start
LH: loop header
LB: loop body
LE: loop exit
PB: predicated region body
PF: predicated region fallthrough
CT: control target
= control target key end

     0   :  { %s1124_s18 = smov 0   ;;  %s1396_s0 = inlined_call_operand.vmem [shape: bf16[128,128], index: 0, kind: input, shape index: {}]   ;;  %s1397_s1 = inlined_call_operand.vmem [shape: bf16[128,128], index: 1, kind: input, shape index: {}]   ;;  %s1398_s2 = inlined_call_operand.vmem [shape: bf16[128,128], index: 2, kind: input, shape index: {}]   ;;  %s1399_s3 = inlined_call_operand.vmem [shape: f32[1,128], index: 3, kind: input, shape index: {}]   ;;  %s1400_s4 = inlined_call_operand.vmem [shape: f32[1,128], index: 4, kind: input, shape index: {}]   ;;  %s1401_s5 = inlined_call_operand.vmem [shape: f32[128,128], index: 5, kind: output, shape index: {}]  }
   0x1 LB: > { %s1130_s19 = sadd.s32 4294967295, %s1091_s18   ;;  %p795_p0 = scmp.ge.s32.totalorder %s1091_s18, 1  ;;  %s1091_s18 = sphi %s1124_s18, %s15_s18  }
   0x2   : > { %p183_p1 = scmp.lt.s32.totalorder %s1091_s18, 3 }
   0x4   : > { %p184_p2 = pnand %p795_p0, %p183_p1 }
   0x5   : > { %s796_s20 = sshll.u32 (!%p184_p2), %s1130_s19, 3  ;;  %p798_p4 = scmp.ne.s32.totalorder (!%p184_p2), %s1130_s19, 0 }
   0x6   : > { %187 = sbr.rel (%p184_p2) target bundleno = 538 (0x21a), region = 40  ;;  %p207_p3 = scmp.lt.s32.totalorder (!%p184_p2), %s796_s20, 15 }
   0xb   : > { %s1403_s20 = smov (!%p207_p3, %s796_s20), 15  ;;  %215 = sbr.rel (%p798_p4) target bundleno = 209 (0xd1), region = 44 }
   0xc   : > { %s797_s21 = sshll.u32 %s1403_s20, 2 }
   0xd   : > { %s1138_s24 = scalar_lea.vmem %s1398_s2, %s797_s21 }
  0x10   : > { %v930_v0 = vld [vmem:[%s1397_s1 + $0x38] sm:$0xff]  ;;  %v929_v1 = vld [vmem:[%s1397_s1 + $0x30] sm:$0xff]  ;;  %v928_v2 = vld [vmem:[%s1397_s1 + $0x28] sm:$0xff] }
  0x11   : > { %344 = vmatpush.bf16.msra.mxu0 %v930_v0  ;;  %990 = vmatpush.bf16.msra.mxu1 %v930_v0  ;;  %v927_v3 = vld [vmem:[%s1397_s1 + $0x20] sm:$0xff]  ;;  %v926_v4 = vld [vmem:[%s1397_s1 + $0x18] sm:$0xff]  ;;  %v925_v5 = vld [vmem:[%s1397_s1 + $0x10] sm:$0xff] }
  0x12   : > { %991 = vmatpush.bf16.msra.mxu2 %v930_v0  ;;  %992 = vmatpush.bf16.msra.mxu3 %v930_v0  ;;  %v924_v6 = vld [vmem:[%s1397_s1 + $0x8] sm:$0xff]  ;;  %v923_v7 = vld [vmem:[%s1397_s1] sm:$0xff]  ;;  %v917_v9 = vld [vmem:[%s1396_s0 + $0x10] sm:$0xff] }
  0x13   : > { %v915_v8 = vld [vmem:[%s1396_s0] sm:$0xff]  ;;  %v921_v11 = vld [vmem:[%s1396_s0 + $0x30] sm:$0xff]  ;;  %v916_v12 = vld [vmem:[%s1396_s0 + $0x8] sm:$0xff] }
  0x14   : > { %v919_v10 = vld [vmem:[%s1396_s0 + $0x20] sm:$0xff]  ;;  %v918_v13 = vld [vmem:[%s1396_s0 + $0x18] sm:$0xff]  ;;  %v920_v14 = vld [vmem:[%s1396_s0 + $0x28] sm:$0xff] }
  0x15   : > { %345 = vmatpush.bf16.msra.mxu0 %v929_v1  ;;  %993 = vmatpush.bf16.msra.mxu1 %v929_v1  ;;  %v922_v15 = vld [vmem:[%s1396_s0 + $0x38] sm:$0xff] }
  0x16   : > { %994 = vmatpush.bf16.msra.mxu2 %v929_v1  ;;  %995 = vmatpush.bf16.msra.mxu3 %v929_v1 }
  0x19   : > { %346 = vmatpush.bf16.msra.mxu0 %v928_v2  ;;  %996 = vmatpush.bf16.msra.mxu1 %v928_v2 }
  0x1a   : > { %997 = vmatpush.bf16.msra.mxu2 %v928_v2  ;;  %998 = vmatpush.bf16.msra.mxu3 %v928_v2 }
  0x1d   : > { %347 = vmatpush.bf16.msra.mxu0 %v927_v3  ;;  %999 = vmatpush.bf16.msra.mxu1 %v927_v3 }
  0x1e   : > { %1000 = vmatpush.bf16.msra.mxu2 %v927_v3  ;;  %1001 = vmatpush.bf16.msra.mxu3 %v927_v3 }
  0x21   : > { %348 = vmatpush.bf16.msra.mxu0 %v926_v4  ;;  %1002 = vmatpush.bf16.msra.mxu1 %v926_v4 }
  0x22   : > { %1003 = vmatpush.bf16.msra.mxu2 %v926_v4  ;;  %1004 = vmatpush.bf16.msra.mxu3 %v926_v4 }
  0x25   : > { %349 = vmatpush.bf16.msra.mxu0 %v925_v5  ;;  %1005 = vmatpush.bf16.msra.mxu1 %v925_v5 }
  0x26   : > { %1006 = vmatpush.bf16.msra.mxu2 %v925_v5  ;;  %1007 = vmatpush.bf16.msra.mxu3 %v925_v5 }
  0x29   : > { %350 = vmatpush.bf16.msra.mxu0 %v924_v6  ;;  %1008 = vmatpush.bf16.msra.mxu1 %v924_v6 }
  0x2a   : > { %1009 = vmatpush.bf16.msra.mxu2 %v924_v6  ;;  %1010 = vmatpush.bf16.msra.mxu3 %v924_v6 }
  0x2d   : > { %351 = vmatpush.bf16.msra.mxu0 %v923_v7  ;;  %1011 = vmatpush.bf16.msra.mxu1 %v923_v7 }
  0x2e   : > { %1012 = vmatpush.bf16.msra.mxu2 %v923_v7  ;;  %1013 = vmatpush.bf16.msra.mxu3 %v923_v7 }
  0x30   : > { %352 = vmatmul.bf16.vlgmr.msra.gmra.mxu0 %v915_v8  ;;  %362 = vmatmul.bf16.vlgmr.msra.gmra.mxu1 %v917_v9 }
  0x31   : > { %372 = vmatmul.bf16.vlgmr.msra.gmra.mxu2 %v919_v10  ;;  %382 = vmatmul.bf16.vlgmr.msra.gmra.mxu3 %v921_v11 }
  0x40   : > { %357 = vmatmul.bf16.gmra.mxu0 %v916_v12  ;;  %367 = vmatmul.bf16.gmra.mxu1 %v918_v13 }
  0x41   : > { %377 = vmatmul.bf16.gmra.mxu2 %v920_v14  ;;  %387 = vmatmul.bf16.gmra.mxu3 %v922_v15 }
  0xad   : > { %v353_v16 = vpop.f32.mrf.mxu0  ;;  %v363_v17 = vpop.f32.mrf.mxu1 }
  0xb4   : > { %v373_v18 = vpop.f32.mrf.mxu2  ;;  %v383_v19 = vpop.f32.mrf.mxu3 }
  0xb5   : > { %v355_v20 = vpop.f32.mrf.mxu0  ;;  %v365_v21 = vpop.f32.mrf.mxu1 }
  0xb6   : > { %v946_v22 = vpack.c.bf16 %v355_v20, %v353_v16  ;;  %v956_v23 = vpack.c.bf16 %v365_v21, %v363_v17 }
  0xb8   : > { %947 = vst [vmem:[#allocation2 + $0x30] sm:$0xff] %v946_v22  }
  0xb9   : > { %984 = vst [vmem:[#allocation2 + $0x18] sm:$0xff] %v956_v23  }
  0xbc   : > { %v375_v24 = vpop.f32.mrf.mxu2  ;;  %v385_v25 = vpop.f32.mrf.mxu3 }
  0xbd   : > { %v966_v26 = vpack.c.bf16 %v375_v24, %v373_v18  ;;  %v976_v27 = vpack.c.bf16 %v385_v25, %v383_v19  ;;  %v358_v28 = vpop.f32.mrf.mxu0  ;;  %v368_v29 = vpop.f32.mrf.mxu1 }
  0xbf   : > { %986 = vst [vmem:[#allocation2 + $0x8] sm:$0xff] %v966_v26  }
  0xc0   : > { %988 = vst [vmem:[#allocation2 + $0x28] sm:$0xff] %v976_v27  }
  0xc4   : > { %v378_v30 = vpop.f32.mrf.mxu2  ;;  %v388_v31 = vpop.f32.mrf.mxu3 }
  0xc5   : > { %v360_v32 = vpop.f32.mrf.mxu0  ;;  %v370_v33 = vpop.f32.mrf.mxu1 }
  0xc6   : > { %v951_v34 = vpack.c.bf16 %v360_v32, %v358_v28  ;;  %v961_v35 = vpack.c.bf16 %v370_v33, %v368_v29 }
  0xc8   : > { %983 = vst [vmem:[#allocation2] sm:$0xff] %v951_v34  }
  0xc9   : > { %985 = vst [vmem:[#allocation2 + $0x10] sm:$0xff] %v961_v35  }
  0xcc   : > { %v380_v36 = vpop.f32.mrf.mxu2  ;;  %v390_v37 = vpop.f32.mrf.mxu3 }
  0xcd   : > { %v971_v38 = vpack.c.bf16 %v380_v36, %v378_v30  ;;  %v981_v39 = vpack.c.bf16 %v390_v37, %v388_v31 }
  0xcf   : > { %987 = vst [vmem:[#allocation2 + $0x20] sm:$0xff] %v971_v38  }
  0xd0   : > { %989 = vst [vmem:[#allocation2 + $0x38] sm:$0xff] %v981_v39  }
  0xd1 PF: > { %v941_v41 = vld [vmem:[#allocation2 + $0x28] sm:$0xff]  ;;  %v938_v44 = vld [vmem:[#allocation2 + $0x10] sm:$0xff]  ;;  %v937_v45 = vld [vmem:[#allocation2 + $0x18] sm:$0xff]  ;;  %s911_s10 = sshll.u32 %s1130_s19, 6  ;;  %p912_p5 = scmp.ne.s32.totalorder %s1130_s19, 1 }
  0xd2   : > { %v939_v43 = vld [vmem:[#allocation2 + $0x8] sm:$0xff]  ;;  %v936_v46 = vld [vmem:[#allocation2] sm:$0xff]  ;;  %v935_v47 = vld [vmem:[#allocation2 + $0x30] sm:$0xff]  ;;  %s551_s13 = scalar_lea.vmem %s1401_s5, %s911_s10 }
  0xd3   : > { %v931_v48 = vld [vmem:[%s1138_s24] sm:$0xff]  ;;  %v932_v49 = vld [vmem:[%s1138_s24 + $0x8] sm:$0xff]  ;;  %v933_v50 = vld [vmem:[%s1138_s24 + $0x10] sm:$0xff] }
  0xd4   : > { %v934_v51 = vld [vmem:[%s1138_s24 + $0x18] sm:$0xff] }
  0xd6   : > { %v940_v42 = vld [vmem:[#allocation2 + $0x20] sm:$0xff] }
  0xd7   : > { %v942_v40 = vld [vmem:[#allocation2 + $0x38] sm:$0xff] }
  0xd8   : > { %521 = vmatpush.bf16.msra.mxu0 %v942_v40  ;;  %1014 = vmatpush.bf16.msra.mxu1 %v942_v40 }
  0xd9   : > { %1015 = vmatpush.bf16.msra.mxu2 %v942_v40  ;;  %1016 = vmatpush.bf16.msra.mxu3 %v942_v40 }
  0xdc   : > { %522 = vmatpush.bf16.msra.mxu0 %v941_v41  ;;  %1017 = vmatpush.bf16.msra.mxu1 %v941_v41 }
  0xdd   : > { %1018 = vmatpush.bf16.msra.mxu2 %v941_v41  ;;  %1019 = vmatpush.bf16.msra.mxu3 %v941_v41 }
  0xe0   : > { %523 = vmatpush.bf16.msra.mxu0 %v940_v42  ;;  %1020 = vmatpush.bf16.msra.mxu1 %v940_v42 }
  0xe1   : > { %1021 = vmatpush.bf16.msra.mxu2 %v940_v42  ;;  %1022 = vmatpush.bf16.msra.mxu3 %v940_v42 }
  0xe4   : > { %524 = vmatpush.bf16.msra.mxu0 %v939_v43  ;;  %1023 = vmatpush.bf16.msra.mxu1 %v939_v43 }
  0xe5   : > { %1024 = vmatpush.bf16.msra.mxu2 %v939_v43  ;;  %1025 = vmatpush.bf16.msra.mxu3 %v939_v43 }
  0xe8   : > { %525 = vmatpush.bf16.msra.mxu0 %v938_v44  ;;  %1026 = vmatpush.bf16.msra.mxu1 %v938_v44 }
  0xe9   : > { %1027 = vmatpush.bf16.msra.mxu2 %v938_v44  ;;  %1028 = vmatpush.bf16.msra.mxu3 %v938_v44 }
  0xec   : > { %526 = vmatpush.bf16.msra.mxu0 %v937_v45  ;;  %1029 = vmatpush.bf16.msra.mxu1 %v937_v45 }
  0xed   : > { %1030 = vmatpush.bf16.msra.mxu2 %v937_v45  ;;  %1031 = vmatpush.bf16.msra.mxu3 %v937_v45 }
  0xf0   : > { %527 = vmatpush.bf16.msra.mxu0 %v936_v46  ;;  %1032 = vmatpush.bf16.msra.mxu1 %v936_v46 }
  0xf1   : > { %1033 = vmatpush.bf16.msra.mxu2 %v936_v46  ;;  %1034 = vmatpush.bf16.msra.mxu3 %v936_v46 }
  0xf4   : > { %528 = vmatpush.bf16.msra.mxu0 %v935_v47  ;;  %1035 = vmatpush.bf16.msra.mxu1 %v935_v47 }
  0xf5   : > { %1036 = vmatpush.bf16.msra.mxu2 %v935_v47  ;;  %1037 = vmatpush.bf16.msra.mxu3 %v935_v47 }
  0xf7   : > { %529 = vmatmul.bf16.vlgmr.msra.gmra.mxu0 %v931_v48  ;;  %534 = vmatmul.bf16.vlgmr.msra.gmra.mxu1 %v932_v49 }
  0xf8   : > { %539 = vmatmul.bf16.vlgmr.msra.gmra.mxu2 %v933_v50  ;;  %544 = vmatmul.bf16.vlgmr.msra.gmra.mxu3 %v934_v51 }
 0x174   : > { %v530_v52 = vpop.f32.mrf.mxu0  ;;  %v535_v53 = vpop.f32.mrf.mxu1 }
 0x175   : > { %552 = vst [vmem:[%s551_s13] sm:$0xff] %v530_v52 }
 0x176   : > { %554 = vst [vmem:[%s551_s13 + $0x10] sm:$0xff] %v535_v53 }
 0x17b   : > { %v540_v54 = vpop.f32.mrf.mxu2  ;;  %v545_v55 = vpop.f32.mrf.mxu3 }
 0x17c   : > { %556 = vst [vmem:[%s551_s13 + $0x20] sm:$0xff] %v540_v54  ;;  %v532_v56 = vpop.f32.mrf.mxu0  ;;  %v537_v57 = vpop.f32.mrf.mxu1 }
 0x17d   : > { %558 = vst [vmem:[%s551_s13 + $0x30] sm:$0xff] %v545_v55 }
 0x17e   : > { %553 = vst [vmem:[%s551_s13 + $0x8] sm:$0xff] %v532_v56 }
 0x17f   : > { %555 = vst [vmem:[%s551_s13 + $0x18] sm:$0xff] %v537_v57 }
 0x181   : > { %563 = sbr.rel (%p912_p5) target bundleno = 538 (0x21a), region = 48 }
 0x183   : > { %v542_v58 = vpop.f32.mrf.mxu2  ;;  %v547_v59 = vpop.f32.mrf.mxu3 }
 0x184   : > { %557 = vst [vmem:[%s551_s13 + $0x28] sm:$0xff] %v542_v58 }
 0x185   : > { %559 = vst [vmem:[%s551_s13 + $0x38] sm:$0xff] %v547_v59 }
 0x186   : > { %v1093_v14 = vmov 128.0  }
 0x187   : > { %1049 = vrcp.f32 %v1093_v14 }
 0x18c   : > { %v564_v60 = vld [vmem:[%s1401_s5] sm:$0xff]  ;;  %v565_v61 = vld [vmem:[%s1401_s5 + $0x8] sm:$0xff]  ;;  %v566_v62 = vld [vmem:[%s1401_s5 + $0x10] sm:$0xff] }
 0x18d   : > { %v580_v63 = vadd.f32 %v565_v61, %v564_v60  ;;  %v567_v0 = vld [vmem:[%s1401_s5 + $0x18] sm:$0xff]  ;;  %v568_v2 = vld [vmem:[%s1401_s5 + $0x20] sm:$0xff]  ;;  %v569_v4 = vld [vmem:[%s1401_s5 + $0x28] sm:$0xff]  ;;  %v1050_v20 = vpop.eup %1049 }
 0x18e   : > { %v570_v6 = vld [vmem:[%s1401_s5 + $0x30] sm:$0xff]  ;;  %v571_v8 = vld [vmem:[%s1401_s5 + $0x38] sm:$0xff]  ;;  %v572_v10 = vld [vmem:[%s1401_s5 + $0x40] sm:$0xff]  ;;  %v602_v25 = vmul.f32 128.0, %v1050_v20  ;;  %vm606_vm0 = vweird.f32 %v1050_v20 }
 0x18f   : > { %v581_v1 = vadd.f32 %v580_v63, %v566_v62  ;;  %v573_v12 = vld [vmem:[%s1401_s5 + $0x48] sm:$0xff]  ;;  %v574_v15 = vld [vmem:[%s1401_s5 + $0x50] sm:$0xff]  ;;  %v575_v17 = vld [vmem:[%s1401_s5 + $0x58] sm:$0xff] }
 0x190   : > { %v576_v19 = vld [vmem:[%s1401_s5 + $0x60] sm:$0xff]  ;;  %v577_v22 = vld [vmem:[%s1401_s5 + $0x68] sm:$0xff]  ;;  %v578_v24 = vld [vmem:[%s1401_s5 + $0x70] sm:$0xff]  ;;  %v603_v29 = vsub.f32 1.0, %v602_v25 }
 0x191   : > { %v582_v3 = vadd.f32 %v581_v1, %v567_v0  ;;  %v579_v27 = vld [vmem:[%s1401_s5 + $0x78] sm:$0xff] }
 0x192   : > { %v604_v32 = vmul.f32 %v1050_v20, %v603_v29 }
 0x193   : > { %v583_v5 = vadd.f32 %v582_v3, %v568_v2 }
 0x194   : > { %v605_v35 = vadd.f32 %v1050_v20, %v604_v32 }
 0x195   : > { %v584_v7 = vadd.f32 %v583_v5, %v569_v4 }
 0x196   : > { %v607_v38 = vsel %vm606_vm0, %v1050_v20, %v605_v35 }
 0x197   : > { %v585_v9 = vadd.f32 %v584_v7, %v570_v6 }
 0x199   : > { %v586_v11 = vadd.f32 %v585_v9, %v571_v8 }
 0x19b   : > { %v587_v13 = vadd.f32 %v586_v11, %v572_v10 }
 0x19d   : > { %v588_v16 = vadd.f32 %v587_v13, %v573_v12 }
 0x19f   : > { %v589_v18 = vadd.f32 %v588_v16, %v574_v15 }
 0x1a1   : > { %v590_v21 = vadd.f32 %v589_v18, %v575_v17 }
 0x1a3   : > { %v591_v23 = vadd.f32 %v590_v21, %v576_v19 }
 0x1a5   : > { %v592_v26 = vadd.f32 %v591_v23, %v577_v22 }
 0x1a7   : > { %v593_v28 = vadd.f32 %v592_v26, %v578_v24 }
 0x1a9   : > { %v594_v30 = vadd.f32 %v593_v28, %v579_v27 }
 0x1ab   : > { %v595_v31 = vrot.slane %v594_v30, 4 }
 0x1ad   : > { %v596_v33 = vadd.f32 %v595_v31, %v594_v30 }
 0x1af   : > { %v597_v34 = vrot.slane %v596_v33, 2 }
 0x1b1   : > { %v598_v36 = vadd.f32 %v597_v34, %v596_v33 }
 0x1b3   : > { %v599_v37 = vrot.slane %v598_v36, 1 }
 0x1b5   : > { %v600_v39 = vadd.f32 %v599_v37, %v598_v36 }
 0x1b7   : > { %v608_v40 = vmul.f32 %v607_v38, %v600_v39  ;;  %v1047_v39 = vld [vmem:[%s1399_s3] ss:$0 sm:$0xff] }
 0x1b9   : > { %v1246_v41 = vsub.f32 %v564_v60, %v608_v40  ;;  %v1248_v42 = vsub.f32 %v565_v61, %v608_v40  ;;  %v1250_v43 = vsub.f32 %v566_v62, %v608_v40  ;;  %v1252_v44 = vsub.f32 %v567_v0, %v608_v40 }
 0x1ba   : > { %v1258_v47 = vsub.f32 %v568_v2, %v608_v40  ;;  %v1262_v49 = vsub.f32 %v569_v4, %v608_v40  ;;  %v1266_v52 = vsub.f32 %v570_v6, %v608_v40  ;;  %v616_v55 = vsub.f32 %v571_v8, %v608_v40 }
 0x1bb   : > { %v625_v45 = vmul.f32 %v1246_v41, %v1246_v41  ;;  %v626_v46 = vmul.f32 %v1248_v42, %v1248_v42  ;;  %v627_v48 = vmul.f32 %v1250_v43, %v1250_v43  ;;  %v628_v50 = vmul.f32 %v1252_v44, %v1252_v44 }
 0x1bc   : > { %v629_v53 = vmul.f32 %v1258_v47, %v1258_v47  ;;  %v630_v56 = vmul.f32 %v1262_v49, %v1262_v49  ;;  %v1272_v58 = vsub.f32 %v572_v10, %v608_v40  ;;  %v631_v59 = vmul.f32 %v1266_v52, %v1266_v52 }
 0x1bd   : > { %v641_v51 = vadd.f32 %v626_v46, %v625_v45  ;;  %v1276_v61 = vsub.f32 %v573_v12, %v608_v40  ;;  %v632_v62 = vmul.f32 %v616_v55, %v616_v55  ;;  %v1278_v0 = vsub.f32 %v574_v15, %v608_v40  ;;  %v1314_v46 = vld [vmem:[%s1400_s4] ss:$0 sm:$0xff] }
 0x1be   : > { %v633_v1 = vmul.f32 %v1272_v58, %v1272_v58  ;;  %v1282_v3 = vsub.f32 %v575_v17, %v608_v40  ;;  %v1286_v6 = vsub.f32 %v576_v19, %v608_v40  ;;  %v1290_v9 = vsub.f32 %v577_v22, %v608_v40 }
 0x1bf   : > { %v642_v54 = vadd.f32 %v641_v51, %v627_v48  ;;  %v634_v4 = vmul.f32 %v1276_v61, %v1276_v61  ;;  %v635_v7 = vmul.f32 %v1278_v0, %v1278_v0  ;;  %v1294_v12 = vsub.f32 %v578_v24, %v608_v40 }
 0x1c0   : > { %v636_v10 = vmul.f32 %v1282_v3, %v1282_v3  ;;  %v637_v13 = vmul.f32 %v1286_v6, %v1286_v6  ;;  %v1298_v15 = vsub.f32 %v579_v27, %v608_v40  ;;  %v638_v16 = vmul.f32 %v1290_v9, %v1290_v9 }
 0x1c1   : > { %v643_v57 = vadd.f32 %v642_v54, %v628_v50  ;;  %v639_v18 = vmul.f32 %v1294_v12, %v1294_v12 }
 0x1c2   : > { %v640_v20 = vmul.f32 %v1298_v15, %v1298_v15 }
 0x1c3   : > { %v644_v60 = vadd.f32 %v643_v57, %v629_v53 }
 0x1c5   : > { %v645_v63 = vadd.f32 %v644_v60, %v630_v56 }
 0x1c7   : > { %v646_v2 = vadd.f32 %v645_v63, %v631_v59 }
 0x1c9   : > { %v647_v5 = vadd.f32 %v646_v2, %v632_v62 }
 0x1cb   : > { %v648_v8 = vadd.f32 %v647_v5, %v633_v1 }
 0x1cd   : > { %v649_v11 = vadd.f32 %v648_v8, %v634_v4 }
 0x1cf   : > { %v650_v14 = vadd.f32 %v649_v11, %v635_v7 }
 0x1d1   : > { %v651_v17 = vadd.f32 %v650_v14, %v636_v10 }
 0x1d3   : > { %v652_v19 = vadd.f32 %v651_v17, %v637_v13 }
 0x1d5   : > { %v653_v21 = vadd.f32 %v652_v19, %v638_v16 }
 0x1d7   : > { %v654_v22 = vadd.f32 %v653_v21, %v639_v18 }
 0x1d9   : > { %v655_v23 = vadd.f32 %v654_v22, %v640_v20 }
 0x1db   : > { %v656_v24 = vrot.slane %v655_v23, 4 }
 0x1dd   : > { %v657_v25 = vadd.f32 %v656_v24, %v655_v23 }
 0x1df   : > { %v658_v26 = vrot.slane %v657_v25, 2 }
 0x1e1   : > { %v659_v28 = vadd.f32 %v658_v26, %v657_v25 }
 0x1e3   : > { %v660_v27 = vrot.slane %v659_v28, 1 }
 0x1e5   : > { %v661_v29 = vadd.f32 %v660_v27, %v659_v28 }
 0x1e7   : > { %v662_v30 = vmul.f32 %v661_v29, %v607_v38 }
 0x1e9   : > { %v663_v31 = vadd.f32 1e-05, %v662_v30 }
 0x1eb   : > { %1051 = vrsqrt.f32 %v663_v31  ;;  %vm670_vm1 = vweird.f32 %v663_v31 }
 0x1f1   : > { %v1052_v32 = vpop.eup %1051 }
 0x1f2   : > { %v665_v33 = vmul.f32 %v1052_v32, %v663_v31  ;;  %vm671_vm2 = vweird.f32 %v1052_v32 }
 0x1f3   : > { %vm672_vm3 = vmor %vm670_vm1, %vm671_vm2 }
 0x1f4   : > { %v666_v34 = vmul.f32 %v1052_v32, %v665_v33 }
 0x1f6   : > { %v667_v35 = vmul.f32 0.5, %v666_v34 }
 0x1f8   : > { %v668_v36 = vsub.f32 1.5, %v667_v35 }
 0x1fa   : > { %v669_v37 = vmul.f32 %v1052_v32, %v668_v36 }
 0x1fc   : > { %v673_v40 = vsel %vm672_vm3, %v1052_v32, %v669_v37 }
 0x1fd   : > { %v674_v45 = vmul.f32 %v673_v40, %v1246_v41  ;;  %v675_v38 = vmul.f32 %v673_v40, %v1248_v42  ;;  %v676_v48 = vmul.f32 %v673_v40, %v1250_v43  ;;  %v677_v50 = vmul.f32 %v673_v40, %v1252_v44 }
 0x1fe   : > { %v678_v51 = vmul.f32 %v673_v40, %v1258_v47  ;;  %v679_v53 = vmul.f32 %v673_v40, %v1262_v49  ;;  %v680_v54 = vmul.f32 %v673_v40, %v1266_v52  ;;  %v681_v56 = vmul.f32 %v673_v40, %v616_v55 }
 0x1ff   : > { %v694_v57 = vmul.f32 %v1047_v39, %v674_v45  ;;  %v695_v41 = vmul.f32 %v1047_v39, %v675_v38  ;;  %v696_v59 = vmul.f32 %v1047_v39, %v676_v48  ;;  %v697_v42 = vmul.f32 %v1047_v39, %v677_v50 }
 0x200   : > { %v698_v60 = vmul.f32 %v1047_v39, %v678_v51  ;;  %v699_v62 = vmul.f32 %v1047_v39, %v679_v53  ;;  %v700_v63 = vmul.f32 %v1047_v39, %v680_v54  ;;  %v701_v2 = vmul.f32 %v1047_v39, %v681_v56 }
 0x201   : > { %v714_v1 = vadd.f32 %v1314_v46, %v694_v57  ;;  %v715_v43 = vadd.f32 %v1314_v46, %v695_v41  ;;  %v716_v44 = vadd.f32 %v1314_v46, %v696_v59  ;;  %v717_v47 = vadd.f32 %v1314_v46, %v697_v42 }
 0x202   : > { %v718_v49 = vadd.f32 %v1314_v46, %v698_v60  ;;  %v719_v52 = vadd.f32 %v1314_v46, %v699_v62  ;;  %v720_v55 = vadd.f32 %v1314_v46, %v700_v63  ;;  %v682_v4 = vmul.f32 %v673_v40, %v1272_v58 }
 0x203   : > { %1053 = vtanh.f32 %v714_v1  ;;  %v683_v5 = vmul.f32 %v673_v40, %v1276_v61  ;;  %v684_v7 = vmul.f32 %v673_v40, %v1278_v0  ;;  %v685_v8 = vmul.f32 %v673_v40, %v1282_v3 }
 0x204   : > { %1055 = vtanh.f32 %v715_v43  ;;  %v686_v10 = vmul.f32 %v673_v40, %v1286_v6  ;;  %v687_v11 = vmul.f32 %v673_v40, %v1290_v9  ;;  %v702_v13 = vmul.f32 %v1047_v39, %v682_v4 }
 0x205   : > { %1057 = vtanh.f32 %v716_v44  ;;  %v703_v14 = vmul.f32 %v1047_v39, %v683_v5  ;;  %v704_v16 = vmul.f32 %v1047_v39, %v684_v7  ;;  %v721_v17 = vadd.f32 %v1314_v46, %v701_v2 }
 0x206   : > { %1059 = vtanh.f32 %v717_v47  ;;  %v705_v18 = vmul.f32 %v1047_v39, %v685_v8  ;;  %v722_v58 = vadd.f32 %v1314_v46, %v702_v13  ;;  %v706_v61 = vmul.f32 %v1047_v39, %v686_v10 }
 0x207   : > { %1061 = vtanh.f32 %v718_v49  ;;  %v723_v0 = vadd.f32 %v1314_v46, %v703_v14  ;;  %v707_v3 = vmul.f32 %v1047_v39, %v687_v11  ;;  %v724_v6 = vadd.f32 %v1314_v46, %v704_v16 }
 0x208   : > { %1063 = vtanh.f32 %v719_v52  ;;  %v688_v9 = vmul.f32 %v673_v40, %v1294_v12  ;;  %v689_v20 = vmul.f32 %v673_v40, %v1298_v15  ;;  %v725_v22 = vadd.f32 %v1314_v46, %v705_v18 }
 0x209   : > { %v1054_v19 = vpop.eup %1053  ;;  %1065 = vtanh.f32 %v720_v55  ;;  %v726_v24 = vadd.f32 %v1314_v46, %v706_v61  ;;  %v727_v15 = vadd.f32 %v1314_v46, %v707_v3 }
 0x20a   : > { %v1056_v21 = vpop.eup %1055  ;;  %746 = vst [vmem:[%s1401_s5] sm:$0xff] %v1054_v19  ;;  %1067 = vtanh.f32 %v721_v17  ;;  %v708_v25 = vmul.f32 %v1047_v39, %v688_v9  ;;  %v709_v12 = vmul.f32 %v1047_v39, %v689_v20 }
 0x20b   : > { %v1058_v23 = vpop.eup %1057  ;;  %747 = vst [vmem:[%s1401_s5 + $0x8] sm:$0xff] %v1056_v21  ;;  %1069 = vtanh.f32 %v722_v58 }
 0x20c   : > { %v1060_v26 = vpop.eup %1059  ;;  %748 = vst [vmem:[%s1401_s5 + $0x10] sm:$0xff] %v1058_v23  ;;  %1071 = vtanh.f32 %v723_v0  ;;  %v728_v27 = vadd.f32 %v1314_v46, %v708_v25  ;;  %v729_v30 = vadd.f32 %v1314_v46, %v709_v12 }
 0x20d   : > { %v1062_v28 = vpop.eup %1061  ;;  %749 = vst [vmem:[%s1401_s5 + $0x18] sm:$0xff] %v1060_v26  ;;  %1073 = vtanh.f32 %v724_v6 }
 0x20e   : > { %v1064_v29 = vpop.eup %1063  ;;  %750 = vst [vmem:[%s1401_s5 + $0x20] sm:$0xff] %v1062_v28  ;;  %1075 = vtanh.f32 %v725_v22 }
 0x20f   : > { %v1066_v31 = vpop.eup %1065  ;;  %751 = vst [vmem:[%s1401_s5 + $0x28] sm:$0xff] %v1064_v29  ;;  %1077 = vtanh.f32 %v726_v24 }
 0x210   : > { %v1068_v32 = vpop.eup %1067  ;;  %752 = vst [vmem:[%s1401_s5 + $0x30] sm:$0xff] %v1066_v31  ;;  %1079 = vtanh.f32 %v727_v15 }
 0x211   : > { %v1070_v33 = vpop.eup %1069  ;;  %753 = vst [vmem:[%s1401_s5 + $0x38] sm:$0xff] %v1068_v32  ;;  %1081 = vtanh.f32 %v728_v27 }
 0x212   : > { %v1072_v34 = vpop.eup %1071  ;;  %754 = vst [vmem:[%s1401_s5 + $0x40] sm:$0xff] %v1070_v33  ;;  %1083 = vtanh.f32 %v729_v30 }
 0x213   : > { %v1074_v35 = vpop.eup %1073  ;;  %755 = vst [vmem:[%s1401_s5 + $0x48] sm:$0xff] %v1072_v34 }
 0x214   : > { %v1076_v36 = vpop.eup %1075  ;;  %756 = vst [vmem:[%s1401_s5 + $0x50] sm:$0xff] %v1074_v35 }
 0x215   : > { %v1078_v37 = vpop.eup %1077  ;;  %757 = vst [vmem:[%s1401_s5 + $0x58] sm:$0xff] %v1076_v36 }
 0x216   : > { %v1080_v39 = vpop.eup %1079  ;;  %758 = vst [vmem:[%s1401_s5 + $0x60] sm:$0xff] %v1078_v37 }
 0x217   : > { %v1082_v40 = vpop.eup %1081  ;;  %759 = vst [vmem:[%s1401_s5 + $0x68] sm:$0xff] %v1080_v39 }
 0x218   : > { %v1084_v45 = vpop.eup %1083  ;;  %760 = vst [vmem:[%s1401_s5 + $0x70] sm:$0xff] %v1082_v40 }
 0x219   : > { %761 = vst [vmem:[%s1401_s5 + $0x78] sm:$0xff] %v1084_v45 }
 0x21a PF: > { %s15_s18 = sadd.s32 1, %s1091_s18  }
 0x21b   : > { %p12_p6 = scmp.ge.s32.totalorder %s15_s18, 4  }
 0x21d   :  { %14 = sbr.rel (!%p12_p6) target bundleno = 1 (0x1), region = 75 }

</bundles_post_ra>
